<compile_context>
chip_gen: v6e
topology: v6e:2x2x1
jax: 0.10.0
libtpu: 0.0.40
codegen_flags: <defaults>
</compile_context>

<pallas_src>
import functools

import jax
import jax.numpy as jnp
from jax import lax
from jax.experimental import pallas as pl
from jax.experimental.pallas import tpu as pltpu


def _round_up(n, m):
    return ((n + m - 1) // m) * m


def _ppo_fused_kernel(x_ref, w1_ref, b1_ref, w2_ref, b2_ref, wh_ref, bh_ref,
                      action_ref, value_ref, *, n_actions):
    x = x_ref[...]

    # lay1 + ReLU (f32 MXU accumulation regardless of the compute dtype).
    h1 = jnp.dot(x, w1_ref[...], preferred_element_type=jnp.float32) + b1_ref[...]
    h1 = jnp.maximum(h1, 0.0).astype(w2_ref.dtype)

    # lay2 + ReLU.
    h2 = jnp.dot(h1, w2_ref[...], preferred_element_type=jnp.float32) + b2_ref[...]
    h2 = jnp.maximum(h2, 0.0).astype(wh_ref.dtype)

    # Fused policy+value head: columns [0, n_actions) = policy logits,
    # column n_actions = value pre-activation, remaining columns = zero pad.
    fused = jnp.dot(h2, wh_ref[...], preferred_element_type=jnp.float32) + bh_ref[...]

    col = lax.broadcasted_iota(jnp.int32, fused.shape, dimension=1)
    is_policy = col < n_actions

    # softmax(dim=1) over the policy columns only (padding -> -inf -> exp 0).
    logits = jnp.where(is_policy, fused, -jnp.inf)
    m = jnp.max(logits, axis=-1, keepdims=True)
    e = jnp.exp(logits - m)
    denom = jnp.sum(e, axis=-1, keepdims=True)
    probs = e / denom                      # exact divide: rows sum to 1

    # Narrow HBM writebacks: only the meaningful columns leave VMEM.
    action_ref[...] = probs[:, :n_actions]
    value_ref[...] = jnp.tanh(fused[:, n_actions:n_actions + 1])


def prepare_params(params, compute_dtype=jnp.float32):
    """One-time parameter prep: pad hidden dims to 128 lanes, fuse the policy
    and value heads into one [30, 128] matmul, cast weights to compute_dtype.

    params: PyTorch-shaped weights stored as [in, out]:
        w1 [obs,50], b1 [1,50], w2 [50,30], b2 [1,30],
        wp [30,A],   bp [1,A],  wv [30,1],  bv [1,1].
    """
    obs_dim, h1_dim = params["w1"].shape
    h2_dim = params["w2"].shape[1]
    n_actions = params["wp"].shape[1]

    H1 = _round_up(h1_dim, 128)            # 50  -> 128
    H2 = _round_up(h2_dim, 128)            # 30  -> 128
    HOUT = _round_up(n_actions + 1, 128)   # A+1 -> 128 (in-kernel only)

    def pad2(a, rows, cols):
        return jnp.pad(a, ((0, rows - a.shape[0]), (0, cols - a.shape[1])))

    prepped = dict(
        w1=pad2(params["w1"], obs_dim, H1).astype(compute_dtype),
        b1=pad2(params["b1"], 1, H1).astype(jnp.float32),
        w2=pad2(params["w2"], H1, H2).astype(compute_dtype),
        b2=pad2(params["b2"], 1, H2).astype(jnp.float32),
        wh=pad2(jnp.concatenate([params["wp"], params["wv"]], axis=1),
                H2, HOUT).astype(compute_dtype),
        bh=pad2(jnp.concatenate([params["bp"], params["bv"]], axis=1),
                1, HOUT).astype(jnp.float32),
    )
    meta = dict(obs_dim=obs_dim, n_actions=n_actions,
                H1=H1, H2=H2, HOUT=HOUT, compute_dtype=compute_dtype)
    return prepped, meta


def ppo_forward(x, prepped, meta, *, block_b=2048):
    """Fused PPO forward.  x: [B, obs_dim] float32.
    Returns (action_probs [B, A], value [B, 1]) in float32 — same semantics as
    the torch module's forward (softmax over dim=1, tanh on the value head).
    """
    B, obs_dim = x.shape
    assert obs_dim == meta["obs_dim"]
    n_actions = meta["n_actions"]
    H1, H2, HOUT = meta["H1"], meta["H2"], meta["HOUT"]
    compute_dtype = meta["compute_dtype"]

    # Batch tile: aim for >= 2 grid steps (v7x megacore), capped at block_b,
    # sublane-aligned.  Weights keep a constant block index -> VMEM-resident.
    tb = max(8, min(block_b, _round_up(pl.cdiv(B, 2), 8)))
    B_pad = _round_up(B, tb)

    x_in = x if x.dtype == compute_dtype else x.astype(compute_dtype)
    if B_pad != B:
        x_in = jnp.pad(x_in, ((0, B_pad - B), (0, 0)))

    kernel = functools.partial(_ppo_fused_kernel, n_actions=n_actions)

    const = lambda i: (0, 0)
    in_specs = [
        pl.BlockSpec((tb, obs_dim), lambda i: (i, 0)),   # x: streamed per tile
        pl.BlockSpec((obs_dim, H1), const),              # weights: resident
        pl.BlockSpec((1, H1), const),
        pl.BlockSpec((H1, H2), const),
        pl.BlockSpec((1, H2), const),
        pl.BlockSpec((H2, HOUT), const),
        pl.BlockSpec((1, HOUT), const),
    ]
    out_specs = (
        pl.BlockSpec((tb, n_actions), lambda i: (i, 0)),
        pl.BlockSpec((tb, 1), lambda i: (i, 0)),
    )
    out_shape = (
        jax.ShapeDtypeStruct((B_pad, n_actions), jnp.float32),
        jax.ShapeDtypeStruct((B_pad, 1), jnp.float32),
    )

    action, value = pl.pallas_call(
        kernel,
        grid=(B_pad // tb,),
        in_specs=in_specs,
        out_specs=out_specs,
        out_shape=out_shape,
        compiler_params=pltpu.CompilerParams(
            # Batch tiles are independent -> shard them over v7x's 2 TCs.
            dimension_semantics=("parallel",),
            # Headroom for large block_b; <= scoped default on v6e/v7x and
            # well under physical VMEM on every generation.
            vmem_limit_bytes=32 * 1024 * 1024),
    )(x_in, prepped["w1"], prepped["b1"], prepped["w2"], prepped["b2"],
      prepped["wh"], prepped["bh"])

    if B_pad != B:          # tiny row slice on already-narrow outputs
        action = action[:B]
        value = value[:B]
    return action, value


def init_params(key, obs_dim, n_actions):
    """Deterministic synthetic parameters (shapes match the PyTorch module)."""
    ks = jax.random.split(key, 8)

    def lin(kw, kb, fan_in, fan_out):
        bound = 1.0 / jnp.sqrt(fan_in)
        w = jax.random.uniform(kw, (fan_in, fan_out), jnp.float32, -bound, bound)
        b = jax.random.uniform(kb, (1, fan_out), jnp.float32, -bound, bound)
        return w, b

    w1, b1 = lin(ks[0], ks[1], obs_dim, 50)
    w2, b2 = lin(ks[2], ks[3], 50, 30)
    wp, bp = lin(ks[4], ks[5], 30, n_actions)
    wv, bv = lin(ks[6], ks[7], 30, 1)
    return dict(w1=w1, b1=b1, w2=w2, b2=b2, wp=wp, bp=bp, wv=wv, bv=bv)


def ppo_forward_ref(x, p):
    """Pure-JAX reference for correctness checks."""
    h1 = jnp.maximum(x @ p["w1"] + p["b1"], 0.0)
    h2 = jnp.maximum(h1 @ p["w2"] + p["b2"], 0.0)
    action = jax.nn.softmax(h2 @ p["wp"] + p["bp"], axis=1)
    value = jnp.tanh(h2 @ p["wv"] + p["bv"])
    return action, value


if __name__ == "__main__":
    # Small, CartPole-like problem: 4-dim observation, 2 discrete actions.
    B, OBS, N_ACT = 2, 4, 2

    key = jax.random.PRNGKey(0)
    kx, kx2, kp = jax.random.split(key, 3)
    x = jax.random.normal(kx, (B, OBS), dtype=jnp.float32)
    params = init_params(kp, OBS, N_ACT)

    # --- float32 path (exact semantics of the torch module) -----------------
    prep_f32, meta_f32 = prepare_params(params, compute_dtype=jnp.float32)
    action, value = ppo_forward(x, prep_f32, meta_f32)
    jax.block_until_ready((action, value))

    action_ref, value_ref = ppo_forward_ref(x, params)
    assert action.shape == (B, N_ACT) and value.shape == (B, 1)
    assert jnp.allclose(action, action_ref, atol=1e-4, rtol=1e-4)
    assert jnp.allclose(value, value_ref, atol=1e-5, rtol=1e-5)
    assert jnp.allclose(jnp.sum(action, axis=1), 1.0, atol=1e-5)

    # --- bf16 deployment path (multi-tile grid; epilogue stays f32) ---------
    B2 = 200
    x2 = jax.random.normal(kx2, (B2, OBS), dtype=jnp.float32)
    prep_bf16, meta_bf16 = prepare_params(params, compute_dtype=jnp.bfloat16)
    a2, v2 = ppo_forward(x2, prep_bf16, meta_bf16)
    jax.block_until_ready((a2, v2))
    a2_ref, v2_ref = ppo_forward_ref(x2, params)
    assert a2.shape == (B2, N_ACT) and v2.shape == (B2, 1)
    assert jnp.allclose(a2, a2_ref, atol=3e-2)
    assert jnp.allclose(v2, v2_ref, atol=3e-2)
    # Exact softmax divide -> rows sum to 1 within f32 rounding.
    assert jnp.allclose(jnp.sum(a2, axis=1), 1.0, atol=1e-3)

    print("KERNEL_OK")
</pallas_src>

<mosaic_0001>
module attributes {stable_mosaic.version = 11 : i64} {
  func.func @_ppo_fused_kernel(%arg0: i32, %arg1: memref<8x4xf32, #tpu.memory_space<vmem>>, %arg2: memref<4x128xf32, #tpu.memory_space<vmem>>, %arg3: memref<1x128xf32, #tpu.memory_space<vmem>>, %arg4: memref<128x128xf32, #tpu.memory_space<vmem>>, %arg5: memref<1x128xf32, #tpu.memory_space<vmem>>, %arg6: memref<128x128xf32, #tpu.memory_space<vmem>>, %arg7: memref<1x128xf32, #tpu.memory_space<vmem>>, %arg8: memref<8x2xf32, #tpu.memory_space<vmem>>, %arg9: memref<8x1xf32, #tpu.memory_space<vmem>>) attributes {dimension_semantics = [#tpu.dimension_semantics<parallel>], iteration_bounds = array<i64: 1>, scalar_prefetch = 0 : i64, scratch_operands = 0 : i64, tpu.core_type = #tpu.core_type<tc>, window_params = [{transform_indices = @transform_0, window_bounds = array<i64: 8, 4>}, {pipeline_mode = #tpu.pipeline_mode<synchronous>, transform_indices = @transform_1, window_bounds = array<i64: 4, 128>}, {pipeline_mode = #tpu.pipeline_mode<synchronous>, transform_indices = @transform_2, window_bounds = array<i64: 1, 128>}, {pipeline_mode = #tpu.pipeline_mode<synchronous>, transform_indices = @transform_3, window_bounds = array<i64: 128, 128>}, {pipeline_mode = #tpu.pipeline_mode<synchronous>, transform_indices = @transform_4, window_bounds = array<i64: 1, 128>}, {pipeline_mode = #tpu.pipeline_mode<synchronous>, transform_indices = @transform_5, window_bounds = array<i64: 128, 128>}, {pipeline_mode = #tpu.pipeline_mode<synchronous>, transform_indices = @transform_6, window_bounds = array<i64: 1, 128>}, {transform_indices = @transform_7, window_bounds = array<i64: 8, 2>}, {transform_indices = @transform_8, window_bounds = array<i64: 8, 1>}]} {
    %c0 = arith.constant 0 : index
    %c0_0 = arith.constant 0 : index
    %0 = vector.load %arg1[%c0, %c0_0] : memref<8x4xf32, #tpu.memory_space<vmem>>, vector<8x4xf32>
    %c0_1 = arith.constant 0 : index
    %c0_2 = arith.constant 0 : index
    %1 = vector.load %arg2[%c0_1, %c0_2] : memref<4x128xf32, #tpu.memory_space<vmem>>, vector<4x128xf32>
    %cst = arith.constant dense<0.000000e+00> : vector<8x128xf32>
    %2 = tpu.matmul %0, %1, %cst {dimension_numbers = #tpu.dot_dimension_numbers<[1], [0], [0], [1], [0, 0, 1, 1], [], []>} : vector<8x4xf32>, vector<4x128xf32>, vector<8x128xf32> -> vector<8x128xf32>
    %c0_3 = arith.constant 0 : index
    %c0_4 = arith.constant 0 : index
    %3 = vector.load %arg3[%c0_3, %c0_4] : memref<1x128xf32, #tpu.memory_space<vmem>>, vector<1x128xf32>
    %4 = vector.broadcast %3 : vector<1x128xf32> to vector<8x128xf32>
    %5 = arith.addf %2, %4 : vector<8x128xf32>
    %cst_5 = arith.constant 0.000000e+00 : f32
    %6 = vector.broadcast %cst_5 : f32 to vector<8x128xf32>
    %7 = arith.maximumf %5, %6 : vector<8x128xf32>
    %c0_6 = arith.constant 0 : index
    %c0_7 = arith.constant 0 : index
    %8 = vector.load %arg4[%c0_6, %c0_7] : memref<128x128xf32, #tpu.memory_space<vmem>>, vector<128x128xf32>
    %cst_8 = arith.constant dense<0.000000e+00> : vector<8x128xf32>
    %9 = tpu.matmul %7, %8, %cst_8 {dimension_numbers = #tpu.dot_dimension_numbers<[1], [0], [0], [1], [0, 0, 1, 1], [], []>} : vector<8x128xf32>, vector<128x128xf32>, vector<8x128xf32> -> vector<8x128xf32>
    %c0_9 = arith.constant 0 : index
    %c0_10 = arith.constant 0 : index
    %10 = vector.load %arg5[%c0_9, %c0_10] : memref<1x128xf32, #tpu.memory_space<vmem>>, vector<1x128xf32>
    %11 = vector.broadcast %10 : vector<1x128xf32> to vector<8x128xf32>
    %12 = arith.addf %9, %11 : vector<8x128xf32>
    %cst_11 = arith.constant 0.000000e+00 : f32
    %13 = vector.broadcast %cst_11 : f32 to vector<8x128xf32>
    %14 = arith.maximumf %12, %13 : vector<8x128xf32>
    %c0_12 = arith.constant 0 : index
    %c0_13 = arith.constant 0 : index
    %15 = vector.load %arg6[%c0_12, %c0_13] : memref<128x128xf32, #tpu.memory_space<vmem>>, vector<128x128xf32>
    %cst_14 = arith.constant dense<0.000000e+00> : vector<8x128xf32>
    %16 = tpu.matmul %14, %15, %cst_14 {dimension_numbers = #tpu.dot_dimension_numbers<[1], [0], [0], [1], [0, 0, 1, 1], [], []>} : vector<8x128xf32>, vector<128x128xf32>, vector<8x128xf32> -> vector<8x128xf32>
    %c0_15 = arith.constant 0 : index
    %c0_16 = arith.constant 0 : index
    %17 = vector.load %arg7[%c0_15, %c0_16] : memref<1x128xf32, #tpu.memory_space<vmem>>, vector<1x128xf32>
    %18 = vector.broadcast %17 : vector<1x128xf32> to vector<8x128xf32>
    %19 = arith.addf %16, %18 : vector<8x128xf32>
    %20 = tpu.iota {dimensions = array<i32: 1>} : vector<8x128xi32>
    %c2_i32 = arith.constant 2 : i32
    %21 = vector.broadcast %c2_i32 : i32 to vector<8x128xi32>
    %22 = arith.cmpi slt, %20, %21 : vector<8x128xi32>
    %cst_17 = arith.constant 0xFF800000 : f32
    %23 = vector.broadcast %cst_17 : f32 to vector<8x128xf32>
    %24 = arith.select %22, %19, %23 : vector<8x128xi1>, vector<8x128xf32>
    %cst_18 = arith.constant dense<0xFF800000> : vector<8xf32>
    %25 = vector.multi_reduction <maximumf>, %24, %cst_18 [1] : vector<8x128xf32> to vector<8xf32>
    %26 = vector.shape_cast %25 : vector<8xf32> to vector<8x1xf32>
    %27 = vector.broadcast %26 : vector<8x1xf32> to vector<8x128xf32>
    %28 = arith.subf %24, %27 : vector<8x128xf32>
    %29 = math.exp %28 : vector<8x128xf32>
    %cst_19 = arith.constant dense<0.000000e+00> : vector<8xf32>
    %30 = vector.multi_reduction <add>, %29, %cst_19 [1] : vector<8x128xf32> to vector<8xf32>
    %31 = vector.shape_cast %30 : vector<8xf32> to vector<8x1xf32>
    %32 = vector.broadcast %31 : vector<8x1xf32> to vector<8x128xf32>
    %33 = arith.divf %29, %32 : vector<8x128xf32>
    %34 = vector.extract_strided_slice %33 {offsets = [0, 0], sizes = [8, 2], strides = [1, 1]} : vector<8x128xf32> to vector<8x2xf32>
    %c0_20 = arith.constant 0 : index
    %c0_21 = arith.constant 0 : index
    %35 = vector.load %arg8[%c0_20, %c0_21] : memref<8x2xf32, #tpu.memory_space<vmem>>, vector<8x2xf32>
    tpu.vector_store %arg8[%c0_20, %c0_21], %34 {strides = array<i32>} : memref<8x2xf32, #tpu.memory_space<vmem>>, vector<8x2xf32>,
    %36 = vector.extract_strided_slice %19 {offsets = [0, 2], sizes = [8, 1], strides = [1, 1]} : vector<8x128xf32> to vector<8x1xf32>
    %37 = math.tanh %36 : vector<8x1xf32>
    %c0_22 = arith.constant 0 : index
    %c0_23 = arith.constant 0 : index
    %38 = vector.load %arg9[%c0_22, %c0_23] : memref<8x1xf32, #tpu.memory_space<vmem>>, vector<8x1xf32>
    tpu.vector_store %arg9[%c0_22, %c0_23], %37 {strides = array<i32>} : memref<8x1xf32, #tpu.memory_space<vmem>>, vector<8x1xf32>,
    return
  }
  func.func @transform_0(%arg0: i32) -> (i32, i32) {
    %c0_i32 = arith.constant 0 : i32
    %c0_i32_0 = arith.constant 0 : i32
    return %arg0, %c0_i32 : i32, i32
  }
  func.func @transform_1(%arg0: i32) -> (i32, i32) {
    %c0_i32 = arith.constant 0 : i32
    %c0_i32_0 = arith.constant 0 : i32
    %c0_i32_1 = arith.constant 0 : i32
    return %c0_i32, %c0_i32_0 : i32, i32
  }
  func.func @transform_2(%arg0: i32) -> (i32, i32) {
    %c0_i32 = arith.constant 0 : i32
    %c0_i32_0 = arith.constant 0 : i32
    %c0_i32_1 = arith.constant 0 : i32
    return %c0_i32, %c0_i32_0 : i32, i32
  }
  func.func @transform_3(%arg0: i32) -> (i32, i32) {
    %c0_i32 = arith.constant 0 : i32
    %c0_i32_0 = arith.constant 0 : i32
    %c0_i32_1 = arith.constant 0 : i32
    return %c0_i32, %c0_i32_0 : i32, i32
  }
  func.func @transform_4(%arg0: i32) -> (i32, i32) {
    %c0_i32 = arith.constant 0 : i32
    %c0_i32_0 = arith.constant 0 : i32
    %c0_i32_1 = arith.constant 0 : i32
    return %c0_i32, %c0_i32_0 : i32, i32
  }
  func.func @transform_5(%arg0: i32) -> (i32, i32) {
    %c0_i32 = arith.constant 0 : i32
    %c0_i32_0 = arith.constant 0 : i32
    %c0_i32_1 = arith.constant 0 : i32
    return %c0_i32, %c0_i32_0 : i32, i32
  }
  func.func @transform_6(%arg0: i32) -> (i32, i32) {
    %c0_i32 = arith.constant 0 : i32
    %c0_i32_0 = arith.constant 0 : i32
    %c0_i32_1 = arith.constant 0 : i32
    return %c0_i32, %c0_i32_0 : i32, i32
  }
  func.func @transform_7(%arg0: i32) -> (i32, i32) {
    %c0_i32 = arith.constant 0 : i32
    %c0_i32_0 = arith.constant 0 : i32
    return %arg0, %c0_i32 : i32, i32
  }
  func.func @transform_8(%arg0: i32) -> (i32, i32) {
    %c0_i32 = arith.constant 0 : i32
    %c0_i32_0 = arith.constant 0 : i32
    return %arg0, %c0_i32 : i32, i32
  }
}

</mosaic_0001>

<bundles_post_ra>
// kernel: tpu_custom_call.1
= control target key start
LH: loop header
LB: loop body
LE: loop exit
PB: predicated region body
PF: predicated region fallthrough
CT: control target
= control target key end

     0   :  { %14 = vsyncpa [#allocation3], 0  ;;  %s654_s0 = inlined_call_operand.vmem [shape: f32[8,4], index: 0, kind: input, shape index: {}]   ;;  %s655_s1 = inlined_call_operand.vmem [shape: f32[4,128], index: 1, kind: input, shape index: {}]   ;;  %s656_s2 = inlined_call_operand.vmem [shape: f32[1,128], index: 2, kind: input, shape index: {}]   ;;  %s657_s3 = inlined_call_operand.hbm [shape: f32[128,128], index: 3, kind: input, shape index: {}]   ;;  %s658_s4 = inlined_call_operand.vmem [shape: f32[1,128], index: 4, kind: input, shape index: {}]   ;;  %s659_s5 = inlined_call_operand.hbm [shape: f32[128,128], index: 5, kind: input, shape index: {}]   ;;  %s660_s6 = inlined_call_operand.vmem [shape: f32[1,128], index: 6, kind: input, shape index: {}]   ;;  %s661_s7 = inlined_call_operand.vmem [shape: f32[8,2], index: 7, kind: output, shape index: {0}]   ;;  %s662_s8 = inlined_call_operand.vmem [shape: f32[8,1], index: 8, kind: output, shape index: {1}]  }
   0x1   :  { %15 = vsyncpa [#allocation5], 0  ;;  %s536_s27 = smov [#allocation2]  }
   0x2   :  { %s27_s28 = sshll.u32 %s536_s27, 4  ;;  %s28_s28 = int_to_ptr.vmem [resolvable:$true] %s27_s28 }
   0x3   :  { %s500_s29 = scalar_lea.vmem %s28_s28, 2048  ;;  %p505_p1 = scmp.lt.s32.totalorder %s28_s28, %s28_s28 }
   0x4   :  { %p501_p0 = scmp.ne.s32.totalorder %s28_s28, %s500_s29  ;;  %p506_p2 = scmp.lt.s32.totalorder %s500_s29, %s500_s29 }
   0x6   :  { %p507_p3 = por %p506_p2, %p505_p1 }
   0x8   :  { %p508_p4 = pnand %p507_p3, %p501_p0 }
   0xa   :  { %511 = shalt.err (!%p508_p4)
}
   0xb   :  { %s537_s30 = smov 128   ;;  %s538_s9 = smov 8  }
   0xc   :  { %33 = dma.hbm_to_vmem [thread:$0]  %s657_s3, 2048, %s28_s28, [#allocation3], %s537_s30, %s537_s30, %s538_s9  }
   0xd   :  { %s539_s12 = smov [#allocation4]  }
   0xe   :  { %s41_s13 = sshll.u32 %s539_s12, 4  ;;  %s42_s13 = int_to_ptr.vmem [resolvable:$true] %s41_s13 }
   0xf   :  { %s520_s14 = scalar_lea.vmem %s42_s13, 2048  ;;  %p525_p6 = scmp.lt.s32.totalorder %s42_s13, %s42_s13 }
  0x10   :  { %p521_p5 = scmp.ne.s32.totalorder %s42_s13, %s520_s14  ;;  %p526_p7 = scmp.lt.s32.totalorder %s520_s14, %s520_s14 }
  0x12   :  { %p527_p8 = por %p526_p7, %p525_p6 }
  0x14   :  { %p528_p9 = pnand %p527_p8, %p521_p5 }
  0x16   :  { %531 = shalt.err (!%p528_p9)
}
  0x17   :  { %47 = dma.hbm_to_vmem [thread:$0]  %s659_s5, 2048, %s42_s13, [#allocation5], %s537_s30, %s537_s30, %s538_s9  }
  0x18   :  { %532 = dma.done.wait [#allocation3], 2048  }
  0x19   :  { %533 = vsyncadd [#allocation3], 4294965248 }
  0x1a   :  { %534 = dma.done.wait [#allocation5], 2048  }
  0x1b   :  { %535 = vsyncadd [#allocation5], 4294965248  ;;  %v540_v0 = vmov 0.0   ;;  %vm541_vm0 = vmmov 0   ;;  %vm69_vm1 = vcmask 1043456   ;;  %vm65_vm2 = vcmask 31744  }
  0x1c   :  { %404 = vmatprep.subr.mxu0 %v540_v0  ;;  %406 = vmatprep.mubr.msk.f32.mxu0 %vm541_vm0, %v540_v0  ;;  %v57_v1 = vld [vmem:[%s655_s1] sm:$0xf]  ;;  %v159_v3 = vld [vmem:[#allocation2 + $0x78] sm:$0xff]  ;;  %v158_v4 = vld [vmem:[#allocation2 + $0x70] sm:$0xff]  ;;  %v331_v45 = vlaneseq  ;;  %vm351_vm4 = vcmask 7168   ;;  %vm344_vm5 = vcmask 15360  }
  0x1d   :  { %409 = vmatprep.subr.mxu1 %v540_v0  ;;  %441 = vmatprep.mubr.msk.f32.mxu1 %vm541_vm0, %v540_v0  ;;  %v56_v2 = vld [vmem:[%s654_s0] sm:$0xff]  ;;  %v157_v5 = vld [vmem:[#allocation2 + $0x68] sm:$0xff]  ;;  %v155_v7 = vld [vmem:[#allocation2 + $0x58] sm:$0xff] }
  0x1e   :  { %405 = vmatpush3.msk.msra.mxu0 %vm69_vm1, %v57_v1  ;;  %410 = vmatpush3.msra.mxu1 %v159_v3  ;;  %v156_v6 = vld [vmem:[#allocation2 + $0x60] sm:$0xff]  ;;  %v154_v8 = vld [vmem:[#allocation2 + $0x50] sm:$0xff]  ;;  %v153_v9 = vld [vmem:[#allocation2 + $0x48] sm:$0xff]  ;;  %v332_v46 = vand.u32 127, %v331_v45 }
  0x1f   :  { %407 = vmatmul.mubr.msk.f32.vlgmr.msra.gmra.mxu0 %vm65_vm2, %v56_v2  ;;  %411 = vmatprep.subr.mxu1 %v540_v0  ;;  %v152_v10 = vld [vmem:[#allocation2 + $0x40] sm:$0xff]  ;;  %v151_v11 = vld [vmem:[#allocation2 + $0x38] sm:$0xff]  ;;  %v150_v12 = vld [vmem:[#allocation2 + $0x30] sm:$0xff] }
  0x20   :  { %412 = vmatpush3.msra.mxu1 %v158_v4  ;;  %444 = vmatprep.subr.mxu0 %v540_v0  ;;  %v149_v13 = vld [vmem:[#allocation2 + $0x28] sm:$0xff]  ;;  %v148_v14 = vld [vmem:[#allocation2 + $0x20] sm:$0xff]  ;;  %v147_v15 = vld [vmem:[#allocation2 + $0x18] sm:$0xff]  ;;  %vm333_vm3 = vcmp.lt.s32.totalorder %v332_v46, 2 }
  0x21   :  { %413 = vmatprep.subr.mxu1 %v540_v0  ;;  %476 = vmatprep.mubr.msk.f32.mxu0 %vm541_vm0, %v540_v0  ;;  %v146_v16 = vld [vmem:[#allocation2 + $0x10] sm:$0xff]  ;;  %v145_v17 = vld [vmem:[#allocation2 + $0x8] sm:$0xff]  ;;  %v144_v18 = vld [vmem:[#allocation2] sm:$0xff] }
  0x22   :  { %414 = vmatpush3.msra.mxu1 %v157_v5  ;;  %v253_v19 = vld [vmem:[#allocation4 + $0x78] sm:$0xff]  ;;  %v252_v20 = vld [vmem:[#allocation4 + $0x70] sm:$0xff]  ;;  %v251_v21 = vld [vmem:[#allocation4 + $0x68] sm:$0xff] }
  0x23   :  { %415 = vmatprep.subr.mxu1 %v540_v0  ;;  %445 = vmatpush3.msra.mxu0 %v253_v19  ;;  %v250_v22 = vld [vmem:[#allocation4 + $0x60] sm:$0xff]  ;;  %v249_v23 = vld [vmem:[#allocation4 + $0x58] sm:$0xff]  ;;  %v248_v24 = vld [vmem:[#allocation4 + $0x50] sm:$0xff] }
  0x24   :  { %416 = vmatpush3.msra.mxu1 %v156_v6  ;;  %446 = vmatprep.subr.mxu0 %v540_v0  ;;  %v247_v25 = vld [vmem:[#allocation4 + $0x48] sm:$0xff]  ;;  %v246_v26 = vld [vmem:[#allocation4 + $0x40] sm:$0xff]  ;;  %v245_v27 = vld [vmem:[#allocation4 + $0x38] sm:$0xff] }
  0x25   :  { %417 = vmatprep.subr.mxu1 %v540_v0  ;;  %447 = vmatpush3.msra.mxu0 %v252_v20  ;;  %v244_v28 = vld [vmem:[#allocation4 + $0x30] sm:$0xff]  ;;  %v243_v29 = vld [vmem:[#allocation4 + $0x28] sm:$0xff]  ;;  %v242_v30 = vld [vmem:[#allocation4 + $0x20] sm:$0xff] }
  0x26   :  { %418 = vmatpush3.msra.mxu1 %v155_v7  ;;  %448 = vmatprep.subr.mxu0 %v540_v0  ;;  %v241_v31 = vld [vmem:[#allocation4 + $0x18] sm:$0xff]  ;;  %v363_v32 = vld [vmem:[%s656_s2] ss:$0 sm:$0xff]  ;;  %v240_v37 = vld [vmem:[#allocation4 + $0x10] sm:$0xff] }
  0x27   :  { %419 = vmatprep.subr.mxu1 %v540_v0  ;;  %449 = vmatpush3.msra.mxu0 %v251_v21  ;;  %v239_v38 = vld [vmem:[#allocation4 + $0x8] sm:$0xff]  ;;  %v238_v39 = vld [vmem:[#allocation4] sm:$0xff] }
  0x28   :  { %420 = vmatpush3.msra.mxu1 %v154_v8  ;;  %450 = vmatprep.subr.mxu0 %v540_v0  ;;  %v366_v40 = vld [vmem:[%s658_s4] ss:$0 sm:$0xff]  ;;  %s542_s4 = smov 126  }
  0x29   :  { %421 = vmatprep.subr.mxu1 %v540_v0  ;;  %451 = vmatpush3.msra.mxu0 %v250_v22  ;;  %v367_v47 = vld [vmem:[%s660_s6] ss:$0 sm:$0xff] }
  0x2a   :  { %422 = vmatpush3.msra.mxu1 %v153_v9  ;;  %452 = vmatprep.subr.mxu0 %v540_v0 }
  0x2b   :  { %423 = vmatprep.subr.mxu1 %v540_v0  ;;  %453 = vmatpush3.msra.mxu0 %v249_v23 }
  0x2c   :  { %424 = vmatpush3.msra.mxu1 %v152_v10  ;;  %454 = vmatprep.subr.mxu0 %v540_v0 }
  0x2d   :  { %425 = vmatprep.subr.mxu1 %v540_v0  ;;  %455 = vmatpush3.msra.mxu0 %v248_v24 }
  0x2e   :  { %426 = vmatpush3.msra.mxu1 %v151_v11  ;;  %456 = vmatprep.subr.mxu0 %v540_v0 }
  0x2f   :  { %427 = vmatprep.subr.mxu1 %v540_v0  ;;  %457 = vmatpush3.msra.mxu0 %v247_v25 }
  0x30   :  { %428 = vmatpush3.msra.mxu1 %v150_v12  ;;  %458 = vmatprep.subr.mxu0 %v540_v0 }
  0x31   :  { %429 = vmatprep.subr.mxu1 %v540_v0  ;;  %459 = vmatpush3.msra.mxu0 %v246_v26 }
  0x32   :  { %430 = vmatpush3.msra.mxu1 %v149_v13  ;;  %460 = vmatprep.subr.mxu0 %v540_v0 }
  0x33   :  { %431 = vmatprep.subr.mxu1 %v540_v0  ;;  %461 = vmatpush3.msra.mxu0 %v245_v27 }
  0x34   :  { %432 = vmatpush3.msra.mxu1 %v148_v14  ;;  %462 = vmatprep.subr.mxu0 %v540_v0 }
  0x35   :  { %433 = vmatprep.subr.mxu1 %v540_v0  ;;  %463 = vmatpush3.msra.mxu0 %v244_v28 }
  0x36   :  { %434 = vmatpush3.msra.mxu1 %v147_v15  ;;  %464 = vmatprep.subr.mxu0 %v540_v0 }
  0x37   :  { %435 = vmatprep.subr.mxu1 %v540_v0  ;;  %465 = vmatpush3.msra.mxu0 %v243_v29 }
  0x38   :  { %436 = vmatpush3.msra.mxu1 %v146_v16  ;;  %466 = vmatprep.subr.mxu0 %v540_v0 }
  0x39   :  { %437 = vmatprep.subr.mxu1 %v540_v0  ;;  %467 = vmatpush3.msra.mxu0 %v242_v30 }
  0x3a   :  { %438 = vmatpush3.msra.mxu1 %v145_v17  ;;  %468 = vmatprep.subr.mxu0 %v540_v0 }
  0x3b   :  { %439 = vmatprep.subr.mxu1 %v540_v0  ;;  %469 = vmatpush3.msra.mxu0 %v241_v31 }
  0x3c   :  { %440 = vmatpush3.msra.mxu1 %v144_v18  ;;  %470 = vmatprep.subr.mxu0 %v540_v0 }
  0x3d   :  { %471 = vmatpush3.msra.mxu0 %v240_v37 }
  0x3e   :  { %472 = vmatprep.subr.mxu0 %v540_v0 }
  0x3f   :  { %473 = vmatpush3.msra.mxu0 %v239_v38 }
  0x40   :  { %474 = vmatprep.subr.mxu0 %v540_v0 }
  0x41   :  { %475 = vmatpush3.msra.mxu0 %v238_v39 }
  0xdf   :  { %v139_v33 = vpop.f32.mrf.mxu0 }
  0xe0   :  { %v140_v34 = vadd.f32 %v363_v32, %v139_v33 }
  0xe1   :  { %v408_v35 = vpop.f32.mrf.mxu0 }
  0xe2   :  { %v143_v36 = vmax.f32 %v140_v34, 0.0 }
  0xe4   :  { %442 = vmatmul.mubr.f32.vlgmr.msra.gmra.mxu1 %v143_v36 }
 0x1a4   :  { %v233_v41 = vpop.f32.mrf.mxu1 }
 0x1a5   :  { %v234_v42 = vadd.f32 %v366_v40, %v233_v41 }
 0x1a6   :  { %v443_v43 = vpop.f32.mrf.mxu1 }
 0x1a7   :  { %v237_v44 = vmax.f32 %v234_v42, 0.0 }
 0x1a9   :  { %477 = vmatmul.mubr.f32.vlgmr.msra.gmra.mxu0 %v237_v44 }
 0x269   :  { %v327_v48 = vpop.f32.mrf.mxu0 }
 0x26a   :  { %v328_v49 = vadd.f32 %v367_v47, %v327_v48 }
 0x26b   :  { %v478_v50 = vpop.f32.mrf.mxu0 }
 0x26c   :  { %486 = vtanh.f32 %v328_v49  ;;  %v334_v51 = vsel %vm333_vm3, %v328_v49, -inf }
 0x26d   :  { %335 = vmax.xlane.f32.xlu0 %v334_v51 }
 0x279   :  { %v487_v52 = vpop.eup %486 }
 0x27a   :  { %348 = vrot.lane.b32.xlu1 %v487_v52, %s542_s4 }
 0x2ec   :  { %v349_v53 = vpop.permute.xlu1 %348 }
 0x2ed   :  { %352 = vst.msk [vmem:[%s662_s8] sm:$0xff] %vm351_vm4, %v349_v53 }
 0x2f6   :  { %v336_v54 = vpop.xlane.xlu0 %335 }
 0x2f7   :  { %v337_v55 = vsub.f32 %v334_v51, %v336_v54 }
 0x2f9   :  { %v338_v56 = vmul.f32 1.442695, %v337_v55 }
 0x2fb   :  { %488 = vpow2.f32 %v338_v56 }
 0x308   :  { %v489_v57 = vpop.eup %488 }
 0x309   :  { %340 = vadd.xlane.f32.xlu0 %v489_v57 }
 0x392   :  { %v341_v58 = vpop.xlane.xlu0 %340 }
 0x393   :  { %490 = vrcp.f32 %v341_v58 }
 0x3a0   :  { %v491_v59 = vpop.eup %490 }
 0x3a1   :  { %v343_v60 = vmul.f32 %v491_v59, %v489_v57 }
 0x3a3   :  { %345 = vst.msk [vmem:[%s661_s7] sm:$0xff] %vm344_vm5, %v343_v60 }
 0x3a4   :  { %361 = vsyncpa [#allocation3], 1 }
 0x3a5   :  { %362 = vsyncpa [#allocation5], 1 }

</bundles_post_ra>
